<compile_context>
chip_gen: v6e
topology: v6e:2x2x1
jax: 0.10.0
libtpu: 0.0.40
codegen_flags: <defaults>
</compile_context>

<pallas_src>
import jax
import jax.numpy as jnp
from jax.experimental import pallas as pl
from jax.experimental.pallas import tpu as pltpu

BN_EPS = 1e-5
_LANE = 128


def _round_up(n, m=_LANE):
    return ((n + m - 1) // m) * m


# --------------------------------- kernel ---------------------------------

def _bn_relu(h, gamma, beta):
    """Training-mode BatchNorm1d (biased batch variance) + ReLU, all f32.

    Two-pass (centered) variance for numerical robustness.  Applied with a
    per-column (1,N) scale so the full-(B,N)-tile VPU work is {sub,mul,add,max};
    rsqrt goes to the EUP slot.  Padded columns (h==0, beta==0) stay exactly 0.
    """
    mean = jnp.mean(h, axis=0, keepdims=True)
    c = h - mean
    var = jnp.mean(c * c, axis=0, keepdims=True)
    scale = gamma * jax.lax.rsqrt(var + BN_EPS)
    return jnp.maximum(c * scale + beta, 0.0)


def fc_ae_kernel(x_ref,
                 w1_ref, g1_ref, be1_ref,
                 w2_ref, g2_ref, be2_ref,
                 w34_ref, g4_ref, be4_ref,
                 w5_ref, g5_ref, be5_ref,
                 w6_ref, b6_ref,
                 out_ref):
    # ---- encoder ----
    h = jnp.dot(x_ref[...], w1_ref[...], preferred_element_type=jnp.float32)
    h = _bn_relu(h, g1_ref[...], be1_ref[...])
    h = jnp.dot(h.astype(jnp.bfloat16), w2_ref[...],
                preferred_element_type=jnp.float32)
    h = _bn_relu(h, g2_ref[...], be2_ref[...])
    # ---- folded encoder-tail / decoder-head linear (w3 @ w4, bias BN-cancelled) ----
    h = jnp.dot(h.astype(jnp.bfloat16), w34_ref[...],
                preferred_element_type=jnp.float32)
    h = _bn_relu(h, g4_ref[...], be4_ref[...])
    # ---- decoder ----
    h = jnp.dot(h.astype(jnp.bfloat16), w5_ref[...],
                preferred_element_type=jnp.float32)
    h = _bn_relu(h, g5_ref[...], be5_ref[...])
    out_ref[...] = (
        jnp.dot(h.astype(jnp.bfloat16), w6_ref[...],
                preferred_element_type=jnp.float32) + b6_ref[...]
    )


# ---------------------------- one-time weight prep ----------------------------

def prepare_params(params):
    """One-time host-side weight prep.  Run ONCE; do not call per forward.

    * folds the two back-to-back linears (w3 @ w4) into a single weight
      (f32 fold then bf16 cast; rounds slightly differently from two separate
      bf16 matmuls -- covered by the bf16-operand tolerance),
    * drops every bias feeding a training-mode BatchNorm (exactly cancelled by
      the mean subtraction),
    * zero-pads D_in, L, D_out to multiples of 128 so every tile is lane-dense
      (padded BN columns: gamma=1, beta=0 -> stay exactly zero through BN+ReLU
      and contribute nothing to later contractions),
    * casts MXU operands (weights) to bf16; BN params / b6 stay f32.
    """
    (w1, b1, g1, be1, w2, b2, g2, be2, w3, b3,
     w4, b4, g4, be4, w5, b5, g5, be5, w6, b6) = params
    del b1, b2, b3, b4, b5  # exactly cancelled by training-mode BN

    D, H = w1.shape
    L = w2.shape[1]
    assert L > 1, "latent_size must be > 1 (torch.squeeze / BatchNorm1d semantics)"
    assert H % _LANE == 0

    Dp_in, Lp, Dp_out = _round_up(D), _round_up(L), _round_up(D)
    w34 = w3 @ w4  # (L, L); its bias is also BN-cancelled

    def pad2(a, shape):
        return jnp.zeros(shape, a.dtype).at[:a.shape[0], :a.shape[1]].set(a)

    def pad_gamma(g, n):
        return jnp.ones((1, n), jnp.float32).at[:, :g.shape[1]].set(g)

    def pad_beta(b, n):
        return jnp.zeros((1, n), jnp.float32).at[:, :b.shape[1]].set(b)

    return dict(
        w1=pad2(w1, (Dp_in, H)).astype(jnp.bfloat16),
        g1=g1, be1=be1,
        w2=pad2(w2, (H, Lp)).astype(jnp.bfloat16),
        g2=pad_gamma(g2, Lp), be2=pad_beta(be2, Lp),
        w34=pad2(w34, (Lp, Lp)).astype(jnp.bfloat16),
        g4=pad_gamma(g4, Lp), be4=pad_beta(be4, Lp),
        w5=pad2(w5, (Lp, H)).astype(jnp.bfloat16),
        g5=g5, be5=be5,
        w6=pad2(w6, (H, Dp_out)).astype(jnp.bfloat16),
        b6=pad_beta(b6, Dp_out),
    )


# --------------------------------- wrapper ---------------------------------

def _vmem_capacity_bytes():
    try:
        return int(pltpu.get_tpu_info().vmem_capacity_bytes)
    except Exception:
        return 64 << 20  # conservative fallback (v7x per-TC VMEM)


@jax.jit
def fully_connected_autoencoder(x, prepped):
    """x: (B, D) float32.  prepped: output of prepare_params (weights ready)."""
    B, D = x.shape
    assert B > 1, "training-mode BatchNorm1d needs batch size > 1"

    Dp_in, H = prepped["w1"].shape
    Lp = prepped["w2"].shape[1]
    Dp_out = prepped["w6"].shape[1]

    # Per-call input prep (fused into this jit): pad D -> Dp_in, cast to bf16.
    xb = jnp.zeros((B, Dp_in), jnp.bfloat16).at[:, :D].set(x.astype(jnp.bfloat16))

    order = ("w1", "g1", "be1", "w2", "g2", "be2", "w34", "g4", "be4",
             "w5", "g5", "be5", "w6", "b6")
    args = (xb,) + tuple(prepped[k] for k in order)

    # Advisory cost estimate for XLA's scheduler.
    flops = 2 * B * (Dp_in * H + H * Lp + Lp * Lp + Lp * H + H * Dp_out)
    arg_bytes = int(sum(int(a.size) * a.dtype.itemsize for a in args))
    out_bytes = B * Dp_out * 4
    cost = pl.CostEstimate(flops=int(flops),
                           transcendentals=int(2 * (H + Lp)),  # rsqrt per BN column
                           bytes_accessed=arg_bytes + out_bytes)

    # Generation-aware scoped-VMEM budget: operands + output + f32 intermediates
    # + bf16 MXU activation copies, 2x headroom, floored at 8 MiB, capped at
    # 75% of this chip's physical VMEM (128 MiB v5e/v6e, 64 MiB v7x).
    act_bytes = B * (2 * H + 2 * Lp) * (4 + 2)
    vmem_need = 2 * (arg_bytes + out_bytes + act_bytes)
    vmem_cap = (_vmem_capacity_bytes() * 3) // 4
    if vmem_need > vmem_cap:
        # TODO(synk): batch-tiled grid with cross-tile sum/sumsq BN for batches
        # that do not fit whole-batch in VMEM (hits first on v7x's 64 MiB).
        raise ValueError(f"batch {B} needs ~{vmem_need >> 20} MiB VMEM, above "
                         f"the {vmem_cap >> 20} MiB budget on this TPU")
    vmem_limit = int(min(max(vmem_need, 8 << 20), vmem_cap))

    vmem = pl.BlockSpec(memory_space=pltpu.MemorySpace.VMEM)
    out = pl.pallas_call(
        fc_ae_kernel,
        out_shape=jax.ShapeDtypeStruct((B, Dp_out), jnp.float32),
        in_specs=[vmem] * len(args),
        out_specs=vmem,
        cost_estimate=cost,
        compiler_params=pltpu.CompilerParams(vmem_limit_bytes=vmem_limit),
    )(*args)
    return out[:, :D]


# ----------------------------- parameters / reference -----------------------------

def _linear_init(key, fan_in, fan_out):
    # PyTorch nn.Linear default init: U(-1/sqrt(fan_in), 1/sqrt(fan_in)).
    kw, kb = jax.random.split(key)
    bound = 1.0 / jnp.sqrt(jnp.float32(fan_in))
    w = jax.random.uniform(kw, (fan_in, fan_out), jnp.float32, -bound, bound)
    b = jax.random.uniform(kb, (1, fan_out), jnp.float32, -bound, bound)
    return w, b


def init_params(key, data_dim, latent_size, hidden=128):
    keys = jax.random.split(key, 6)
    w1, b1 = _linear_init(keys[0], data_dim, hidden)
    w2, b2 = _linear_init(keys[1], hidden, latent_size)
    w3, b3 = _linear_init(keys[2], latent_size, latent_size)
    w4, b4 = _linear_init(keys[3], latent_size, latent_size)
    w5, b5 = _linear_init(keys[4], latent_size, hidden)
    w6, b6 = _linear_init(keys[5], hidden, data_dim)

    def bn(n):  # PyTorch BatchNorm1d default affine init: gamma=1, beta=0
        return jnp.ones((1, n), jnp.float32), jnp.zeros((1, n), jnp.float32)

    g1, be1 = bn(hidden)
    g2, be2 = bn(latent_size)
    g4, be4 = bn(latent_size)
    g5, be5 = bn(hidden)

    return [w1, b1, g1, be1,
            w2, b2, g2, be2,
            w3, b3,
            w4, b4, g4, be4,
            w5, b5, g5, be5,
            w6, b6]


def _reference(x, p):
    """Faithful f32 re-implementation of the PyTorch forward (training-mode BN)."""
    (w1, b1, g1, be1, w2, b2, g2, be2, w3, b3,
     w4, b4, g4, be4, w5, b5, g5, be5, w6, b6) = p

    def bn_relu(h, g, be):
        m = jnp.mean(h, axis=0, keepdims=True)
        v = jnp.mean((h - m) ** 2, axis=0, keepdims=True)
        return jnp.maximum((h - m) / jnp.sqrt(v + BN_EPS) * g + be, 0.0)

    h = bn_relu(x @ w1 + b1, g1, be1)
    h = bn_relu(h @ w2 + b2, g2, be2)
    z = h @ w3 + b3
    h = bn_relu(z @ w4 + b4, g4, be4)
    h = bn_relu(h @ w5 + b5, g5, be5)
    return h @ w6 + b6


if __name__ == "__main__":
    B, D, LATENT = 8, 16, 32   # data_shape[0] = 16, latent_size = 32

    key = jax.random.PRNGKey(0)
    kx, kp = jax.random.split(key)
    x = jax.random.normal(kx, (B, D), jnp.float32)
    params = init_params(kp, D, LATENT)

    prepped = prepare_params(params)            # one-time weight prep (not per-call)
    out = fully_connected_autoencoder(x, prepped)
    out = jax.block_until_ready(out)

    ref = _reference(x, params)
    # Tolerance accounts for bf16 MXU operands (f32 accumulation) + w3@w4 fold.
    if not jnp.allclose(out, ref, atol=5e-2, rtol=5e-2):
        raise AssertionError("Pallas kernel output does not match JAX reference")

    print("KERNEL_OK")
</pallas_src>

<mosaic_0001>
module attributes {stable_mosaic.version = 11 : i64} {
  func.func @fc_ae_kernel(%arg0: memref<8x128xbf16, #tpu.memory_space<vmem>>, %arg1: memref<128x128xbf16, #tpu.memory_space<vmem>>, %arg2: memref<1x128xf32, #tpu.memory_space<vmem>>, %arg3: memref<1x128xf32, #tpu.memory_space<vmem>>, %arg4: memref<128x128xbf16, #tpu.memory_space<vmem>>, %arg5: memref<1x128xf32, #tpu.memory_space<vmem>>, %arg6: memref<1x128xf32, #tpu.memory_space<vmem>>, %arg7: memref<128x128xbf16, #tpu.memory_space<vmem>>, %arg8: memref<1x128xf32, #tpu.memory_space<vmem>>, %arg9: memref<1x128xf32, #tpu.memory_space<vmem>>, %arg10: memref<128x128xbf16, #tpu.memory_space<vmem>>, %arg11: memref<1x128xf32, #tpu.memory_space<vmem>>, %arg12: memref<1x128xf32, #tpu.memory_space<vmem>>, %arg13: memref<128x128xbf16, #tpu.memory_space<vmem>>, %arg14: memref<1x128xf32, #tpu.memory_space<vmem>>, %arg15: memref<8x128xf32, #tpu.memory_space<vmem>>) attributes {dimension_semantics = [], scalar_prefetch = 0 : i64, scratch_operands = 0 : i64, tpu.core_type = #tpu.core_type<tc>} {
    %c0 = arith.constant 0 : index
    %c0_0 = arith.constant 0 : index
    %0 = vector.load %arg0[%c0, %c0_0] : memref<8x128xbf16, #tpu.memory_space<vmem>>, vector<8x128xbf16>
    %c0_1 = arith.constant 0 : index
    %c0_2 = arith.constant 0 : index
    %1 = vector.load %arg1[%c0_1, %c0_2] : memref<128x128xbf16, #tpu.memory_space<vmem>>, vector<128x128xbf16>
    %cst = arith.constant dense<0.000000e+00> : vector<8x128xf32>
    %2 = tpu.matmul %0, %1, %cst {dimension_numbers = #tpu.dot_dimension_numbers<[1], [0], [0], [1], [0, 0, 1, 1], [], []>} : vector<8x128xbf16>, vector<128x128xbf16>, vector<8x128xf32> -> vector<8x128xf32>
    %c0_3 = arith.constant 0 : index
    %c0_4 = arith.constant 0 : index
    %3 = vector.load %arg2[%c0_3, %c0_4] : memref<1x128xf32, #tpu.memory_space<vmem>>, vector<1x128xf32>
    %c0_5 = arith.constant 0 : index
    %c0_6 = arith.constant 0 : index
    %4 = vector.load %arg3[%c0_5, %c0_6] : memref<1x128xf32, #tpu.memory_space<vmem>>, vector<1x128xf32>
    %cst_7 = arith.constant dense<0.000000e+00> : vector<128xf32>
    %5 = vector.multi_reduction <add>, %2, %cst_7 [0] : vector<8x128xf32> to vector<128xf32>
    %6 = vector.shape_cast %5 : vector<128xf32> to vector<1x128xf32>
    %cst_8 = arith.constant 8.000000e+00 : f32
    %7 = vector.broadcast %cst_8 : f32 to vector<1x128xf32>
    %8 = arith.divf %6, %7 : vector<1x128xf32>
    %9 = vector.broadcast %8 : vector<1x128xf32> to vector<8x128xf32>
    %10 = arith.subf %2, %9 : vector<8x128xf32>
    %11 = arith.mulf %10, %10 : vector<8x128xf32>
    %cst_9 = arith.constant dense<0.000000e+00> : vector<128xf32>
    %12 = vector.multi_reduction <add>, %11, %cst_9 [0] : vector<8x128xf32> to vector<128xf32>
    %13 = vector.shape_cast %12 : vector<128xf32> to vector<1x128xf32>
    %cst_10 = arith.constant 8.000000e+00 : f32
    %14 = vector.broadcast %cst_10 : f32 to vector<1x128xf32>
    %15 = arith.divf %13, %14 : vector<1x128xf32>
    %cst_11 = arith.constant 9.99999974E-6 : f32
    %16 = vector.broadcast %cst_11 : f32 to vector<1x128xf32>
    %17 = arith.addf %15, %16 : vector<1x128xf32>
    %18 = math.rsqrt %17 : vector<1x128xf32>
    %19 = arith.mulf %3, %18 : vector<1x128xf32>
    %20 = vector.broadcast %19 : vector<1x128xf32> to vector<8x128xf32>
    %21 = arith.mulf %10, %20 : vector<8x128xf32>
    %22 = vector.broadcast %4 : vector<1x128xf32> to vector<8x128xf32>
    %23 = arith.addf %21, %22 : vector<8x128xf32>
    %cst_12 = arith.constant 0.000000e+00 : f32
    %24 = vector.broadcast %cst_12 : f32 to vector<8x128xf32>
    %25 = arith.maximumf %23, %24 : vector<8x128xf32>
    %26 = arith.truncf %25 : vector<8x128xf32> to vector<8x128xbf16>
    %c0_13 = arith.constant 0 : index
    %c0_14 = arith.constant 0 : index
    %27 = vector.load %arg4[%c0_13, %c0_14] : memref<128x128xbf16, #tpu.memory_space<vmem>>, vector<128x128xbf16>
    %cst_15 = arith.constant dense<0.000000e+00> : vector<8x128xf32>
    %28 = tpu.matmul %26, %27, %cst_15 {dimension_numbers = #tpu.dot_dimension_numbers<[1], [0], [0], [1], [0, 0, 1, 1], [], []>} : vector<8x128xbf16>, vector<128x128xbf16>, vector<8x128xf32> -> vector<8x128xf32>
    %c0_16 = arith.constant 0 : index
    %c0_17 = arith.constant 0 : index
    %29 = vector.load %arg5[%c0_16, %c0_17] : memref<1x128xf32, #tpu.memory_space<vmem>>, vector<1x128xf32>
    %c0_18 = arith.constant 0 : index
    %c0_19 = arith.constant 0 : index
    %30 = vector.load %arg6[%c0_18, %c0_19] : memref<1x128xf32, #tpu.memory_space<vmem>>, vector<1x128xf32>
    %cst_20 = arith.constant dense<0.000000e+00> : vector<128xf32>
    %31 = vector.multi_reduction <add>, %28, %cst_20 [0] : vector<8x128xf32> to vector<128xf32>
    %32 = vector.shape_cast %31 : vector<128xf32> to vector<1x128xf32>
    %cst_21 = arith.constant 8.000000e+00 : f32
    %33 = vector.broadcast %cst_21 : f32 to vector<1x128xf32>
    %34 = arith.divf %32, %33 : vector<1x128xf32>
    %35 = vector.broadcast %34 : vector<1x128xf32> to vector<8x128xf32>
    %36 = arith.subf %28, %35 : vector<8x128xf32>
    %37 = arith.mulf %36, %36 : vector<8x128xf32>
    %cst_22 = arith.constant dense<0.000000e+00> : vector<128xf32>
    %38 = vector.multi_reduction <add>, %37, %cst_22 [0] : vector<8x128xf32> to vector<128xf32>
    %39 = vector.shape_cast %38 : vector<128xf32> to vector<1x128xf32>
    %cst_23 = arith.constant 8.000000e+00 : f32
    %40 = vector.broadcast %cst_23 : f32 to vector<1x128xf32>
    %41 = arith.divf %39, %40 : vector<1x128xf32>
    %cst_24 = arith.constant 9.99999974E-6 : f32
    %42 = vector.broadcast %cst_24 : f32 to vector<1x128xf32>
    %43 = arith.addf %41, %42 : vector<1x128xf32>
    %44 = math.rsqrt %43 : vector<1x128xf32>
    %45 = arith.mulf %29, %44 : vector<1x128xf32>
    %46 = vector.broadcast %45 : vector<1x128xf32> to vector<8x128xf32>
    %47 = arith.mulf %36, %46 : vector<8x128xf32>
    %48 = vector.broadcast %30 : vector<1x128xf32> to vector<8x128xf32>
    %49 = arith.addf %47, %48 : vector<8x128xf32>
    %cst_25 = arith.constant 0.000000e+00 : f32
    %50 = vector.broadcast %cst_25 : f32 to vector<8x128xf32>
    %51 = arith.maximumf %49, %50 : vector<8x128xf32>
    %52 = arith.truncf %51 : vector<8x128xf32> to vector<8x128xbf16>
    %c0_26 = arith.constant 0 : index
    %c0_27 = arith.constant 0 : index
    %53 = vector.load %arg7[%c0_26, %c0_27] : memref<128x128xbf16, #tpu.memory_space<vmem>>, vector<128x128xbf16>
    %cst_28 = arith.constant dense<0.000000e+00> : vector<8x128xf32>
    %54 = tpu.matmul %52, %53, %cst_28 {dimension_numbers = #tpu.dot_dimension_numbers<[1], [0], [0], [1], [0, 0, 1, 1], [], []>} : vector<8x128xbf16>, vector<128x128xbf16>, vector<8x128xf32> -> vector<8x128xf32>
    %c0_29 = arith.constant 0 : index
    %c0_30 = arith.constant 0 : index
    %55 = vector.load %arg8[%c0_29, %c0_30] : memref<1x128xf32, #tpu.memory_space<vmem>>, vector<1x128xf32>
    %c0_31 = arith.constant 0 : index
    %c0_32 = arith.constant 0 : index
    %56 = vector.load %arg9[%c0_31, %c0_32] : memref<1x128xf32, #tpu.memory_space<vmem>>, vector<1x128xf32>
    %cst_33 = arith.constant dense<0.000000e+00> : vector<128xf32>
    %57 = vector.multi_reduction <add>, %54, %cst_33 [0] : vector<8x128xf32> to vector<128xf32>
    %58 = vector.shape_cast %57 : vector<128xf32> to vector<1x128xf32>
    %cst_34 = arith.constant 8.000000e+00 : f32
    %59 = vector.broadcast %cst_34 : f32 to vector<1x128xf32>
    %60 = arith.divf %58, %59 : vector<1x128xf32>
    %61 = vector.broadcast %60 : vector<1x128xf32> to vector<8x128xf32>
    %62 = arith.subf %54, %61 : vector<8x128xf32>
    %63 = arith.mulf %62, %62 : vector<8x128xf32>
    %cst_35 = arith.constant dense<0.000000e+00> : vector<128xf32>
    %64 = vector.multi_reduction <add>, %63, %cst_35 [0] : vector<8x128xf32> to vector<128xf32>
    %65 = vector.shape_cast %64 : vector<128xf32> to vector<1x128xf32>
    %cst_36 = arith.constant 8.000000e+00 : f32
    %66 = vector.broadcast %cst_36 : f32 to vector<1x128xf32>
    %67 = arith.divf %65, %66 : vector<1x128xf32>
    %cst_37 = arith.constant 9.99999974E-6 : f32
    %68 = vector.broadcast %cst_37 : f32 to vector<1x128xf32>
    %69 = arith.addf %67, %68 : vector<1x128xf32>
    %70 = math.rsqrt %69 : vector<1x128xf32>
    %71 = arith.mulf %55, %70 : vector<1x128xf32>
    %72 = vector.broadcast %71 : vector<1x128xf32> to vector<8x128xf32>
    %73 = arith.mulf %62, %72 : vector<8x128xf32>
    %74 = vector.broadcast %56 : vector<1x128xf32> to vector<8x128xf32>
    %75 = arith.addf %73, %74 : vector<8x128xf32>
    %cst_38 = arith.constant 0.000000e+00 : f32
    %76 = vector.broadcast %cst_38 : f32 to vector<8x128xf32>
    %77 = arith.maximumf %75, %76 : vector<8x128xf32>
    %78 = arith.truncf %77 : vector<8x128xf32> to vector<8x128xbf16>
    %c0_39 = arith.constant 0 : index
    %c0_40 = arith.constant 0 : index
    %79 = vector.load %arg10[%c0_39, %c0_40] : memref<128x128xbf16, #tpu.memory_space<vmem>>, vector<128x128xbf16>
    %cst_41 = arith.constant dense<0.000000e+00> : vector<8x128xf32>
    %80 = tpu.matmul %78, %79, %cst_41 {dimension_numbers = #tpu.dot_dimension_numbers<[1], [0], [0], [1], [0, 0, 1, 1], [], []>} : vector<8x128xbf16>, vector<128x128xbf16>, vector<8x128xf32> -> vector<8x128xf32>
    %c0_42 = arith.constant 0 : index
    %c0_43 = arith.constant 0 : index
    %81 = vector.load %arg11[%c0_42, %c0_43] : memref<1x128xf32, #tpu.memory_space<vmem>>, vector<1x128xf32>
    %c0_44 = arith.constant 0 : index
    %c0_45 = arith.constant 0 : index
    %82 = vector.load %arg12[%c0_44, %c0_45] : memref<1x128xf32, #tpu.memory_space<vmem>>, vector<1x128xf32>
    %cst_46 = arith.constant dense<0.000000e+00> : vector<128xf32>
    %83 = vector.multi_reduction <add>, %80, %cst_46 [0] : vector<8x128xf32> to vector<128xf32>
    %84 = vector.shape_cast %83 : vector<128xf32> to vector<1x128xf32>
    %cst_47 = arith.constant 8.000000e+00 : f32
    %85 = vector.broadcast %cst_47 : f32 to vector<1x128xf32>
    %86 = arith.divf %84, %85 : vector<1x128xf32>
    %87 = vector.broadcast %86 : vector<1x128xf32> to vector<8x128xf32>
    %88 = arith.subf %80, %87 : vector<8x128xf32>
    %89 = arith.mulf %88, %88 : vector<8x128xf32>
    %cst_48 = arith.constant dense<0.000000e+00> : vector<128xf32>
    %90 = vector.multi_reduction <add>, %89, %cst_48 [0] : vector<8x128xf32> to vector<128xf32>
    %91 = vector.shape_cast %90 : vector<128xf32> to vector<1x128xf32>
    %cst_49 = arith.constant 8.000000e+00 : f32
    %92 = vector.broadcast %cst_49 : f32 to vector<1x128xf32>
    %93 = arith.divf %91, %92 : vector<1x128xf32>
    %cst_50 = arith.constant 9.99999974E-6 : f32
    %94 = vector.broadcast %cst_50 : f32 to vector<1x128xf32>
    %95 = arith.addf %93, %94 : vector<1x128xf32>
    %96 = math.rsqrt %95 : vector<1x128xf32>
    %97 = arith.mulf %81, %96 : vector<1x128xf32>
    %98 = vector.broadcast %97 : vector<1x128xf32> to vector<8x128xf32>
    %99 = arith.mulf %88, %98 : vector<8x128xf32>
    %100 = vector.broadcast %82 : vector<1x128xf32> to vector<8x128xf32>
    %101 = arith.addf %99, %100 : vector<8x128xf32>
    %cst_51 = arith.constant 0.000000e+00 : f32
    %102 = vector.broadcast %cst_51 : f32 to vector<8x128xf32>
    %103 = arith.maximumf %101, %102 : vector<8x128xf32>
    %104 = arith.truncf %103 : vector<8x128xf32> to vector<8x128xbf16>
    %c0_52 = arith.constant 0 : index
    %c0_53 = arith.constant 0 : index
    %105 = vector.load %arg13[%c0_52, %c0_53] : memref<128x128xbf16, #tpu.memory_space<vmem>>, vector<128x128xbf16>
    %cst_54 = arith.constant dense<0.000000e+00> : vector<8x128xf32>
    %106 = tpu.matmul %104, %105, %cst_54 {dimension_numbers = #tpu.dot_dimension_numbers<[1], [0], [0], [1], [0, 0, 1, 1], [], []>} : vector<8x128xbf16>, vector<128x128xbf16>, vector<8x128xf32> -> vector<8x128xf32>
    %c0_55 = arith.constant 0 : index
    %c0_56 = arith.constant 0 : index
    %107 = vector.load %arg14[%c0_55, %c0_56] : memref<1x128xf32, #tpu.memory_space<vmem>>, vector<1x128xf32>
    %108 = vector.broadcast %107 : vector<1x128xf32> to vector<8x128xf32>
    %109 = arith.addf %106, %108 : vector<8x128xf32>
    %c0_57 = arith.constant 0 : index
    %c0_58 = arith.constant 0 : index
    %110 = vector.load %arg15[%c0_57, %c0_58] : memref<8x128xf32, #tpu.memory_space<vmem>>, vector<8x128xf32>
    tpu.vector_store %arg15[%c0_57, %c0_58], %109 {strides = array<i32>} : memref<8x128xf32, #tpu.memory_space<vmem>>, vector<8x128xf32>,
    return
  }
}

</mosaic_0001>

<bundles_post_ra>
// kernel: fully_connected_autoencoder.1
= control target key start
LH: loop header
LB: loop body
LE: loop exit
PB: predicated region body
PF: predicated region fallthrough
CT: control target
= control target key end

     0   :  { %20 = vsyncpa [#allocation3], 0  ;;  %s1400_s0 = inlined_call_operand.vmem [shape: bf16[8,128], index: 0, kind: input, shape index: {}]   ;;  %s1401_s1 = inlined_call_operand.hbm [shape: bf16[128,128], index: 1, kind: input, shape index: {}]   ;;  %s1402_s2 = inlined_call_operand.vmem [shape: f32[1,128], index: 2, kind: input, shape index: {}]   ;;  %s1403_s3 = inlined_call_operand.vmem [shape: f32[1,128], index: 3, kind: input, shape index: {}]   ;;  %s1404_s4 = inlined_call_operand.hbm [shape: bf16[128,128], index: 4, kind: input, shape index: {}]   ;;  %s1405_s5 = inlined_call_operand.vmem [shape: f32[1,128], index: 5, kind: input, shape index: {}]   ;;  %s1406_s6 = inlined_call_operand.vmem [shape: f32[1,128], index: 6, kind: input, shape index: {}]   ;;  %s1407_s7 = inlined_call_operand.hbm [shape: bf16[128,128], index: 7, kind: input, shape index: {}]   ;;  %s1408_s8 = inlined_call_operand.vmem [shape: f32[1,128], index: 8, kind: input, shape index: {}]   ;;  %s1409_s9 = inlined_call_operand.vmem [shape: f32[1,128], index: 9, kind: input, shape index: {}]   ;;  %s1410_s10 = inlined_call_operand.hbm [shape: bf16[128,128], index: 10, kind: input, shape index: {}]   ;;  %s1411_s11 = inlined_call_operand.vmem [shape: f32[1,128], index: 11, kind: input, shape index: {}]   ;;  %s1412_s12 = inlined_call_operand.vmem [shape: f32[1,128], index: 12, kind: input, shape index: {}]   ;;  %s1413_s13 = inlined_call_operand.hbm [shape: bf16[128,128], index: 13, kind: input, shape index: {}]   ;;  %s1414_s14 = inlined_call_operand.vmem [shape: f32[1,128], index: 14, kind: input, shape index: {}]   ;;  %s1415_s15 = inlined_call_operand.hbm [shape: f32[8,128], index: 15, kind: output, shape index: {}]  }
   0x1   :  { %21 = vsyncpa [#allocation6], 0 }
   0x2   :  { %22 = vsyncpa [#allocation9], 0 }
   0x3   :  { %23 = vsyncpa [#allocation4], 0  ;;  %s1191_s18 = smov [#allocation5]   ;;  %s1192_s20 = smov [#allocation8]  }
   0x4   :  { %s47_s19 = sshll.u32 %s1191_s18, 4  ;;  %s79_s21 = sshll.u32 %s1192_s20, 4  ;;  %s48_s19 = int_to_ptr.vmem [resolvable:$true] %s47_s19  ;;  %s80_s21 = int_to_ptr.vmem [resolvable:$true] %s79_s21 }
   0x5   :  { %s1071_s22 = scalar_lea.vmem %s48_s19, 1024  ;;  %p1076_p1 = scmp.lt.s32.totalorder %s48_s19, %s48_s19 }
   0x6   :  { %p1072_p0 = scmp.ne.s32.totalorder %s48_s19, %s1071_s22  ;;  %p1077_p2 = scmp.lt.s32.totalorder %s1071_s22, %s1071_s22 }
   0x8   :  { %p1078_p3 = por %p1077_p2, %p1076_p1 }
   0xa   :  { %p1079_p4 = pnand %p1078_p3, %p1072_p0 }
   0xc   :  { %1082 = shalt.err (!%p1079_p4)
}
   0xd   :  { %s1193_s23 = smov 64   ;;  %s1194_s24 = smov 4  }
   0xe   :  { %53 = dma.hbm_to_vmem [thread:$0]  %s1404_s4, 1024, %s48_s19, [#allocation6], %s1193_s23, %s1193_s23, %s1194_s24  }
   0xf   :  { %s1091_s27 = scalar_lea.vmem %s80_s21, 1024  ;;  %p1096_p6 = scmp.lt.s32.totalorder %s80_s21, %s80_s21 }
  0x10   :  { %p1092_p5 = scmp.ne.s32.totalorder %s80_s21, %s1091_s27  ;;  %p1097_p7 = scmp.lt.s32.totalorder %s1091_s27, %s1091_s27 }
  0x12   :  { %p1098_p8 = por %p1097_p7, %p1096_p6 }
  0x14   :  { %p1099_p9 = pnand %p1098_p8, %p1092_p5 }
  0x16   :  { %1102 = shalt.err (!%p1099_p9)
}
  0x17   :  { %85 = dma.hbm_to_vmem [thread:$0]  %s1410_s10, 1024, %s80_s21, [#allocation9], %s1193_s23, %s1193_s23, %s1194_s24  }
  0x18   :  { %s1195_s30 = smov [#allocation2]   ;;  %s1196_s17 = smov [#allocation7]  }
  0x19   :  { %s31_s16 = sshll.u32 %s1195_s30, 4  ;;  %s63_s18 = sshll.u32 %s1196_s17, 4  ;;  %s32_s16 = int_to_ptr.vmem [resolvable:$true] %s31_s16  ;;  %s64_s18 = int_to_ptr.vmem [resolvable:$true] %s63_s18 }
  0x1a   :  { %s1111_s4 = scalar_lea.vmem %s32_s16, 1024  ;;  %p1116_p11 = scmp.lt.s32.totalorder %s32_s16, %s32_s16 }
  0x1b   :  { %p1112_p10 = scmp.ne.s32.totalorder %s32_s16, %s1111_s4  ;;  %p1117_p12 = scmp.lt.s32.totalorder %s1111_s4, %s1111_s4 }
  0x1d   :  { %p1118_p13 = por %p1117_p12, %p1116_p11 }
  0x1f   :  { %p1119_p0 = pnand %p1118_p13, %p1112_p10 }
  0x21   :  { %1122 = shalt.err (!%p1119_p0)
}
  0x22   :  { %37 = dma.hbm_to_vmem [thread:$0]  %s1401_s1, 1024, %s32_s16, [#allocation3], %s1193_s23, %s1193_s23, %s1194_s24  }
  0x23   :  { %s1131_s10 = scalar_lea.vmem %s64_s18, 1024  ;;  %p1136_p2 = scmp.lt.s32.totalorder %s64_s18, %s64_s18 }
  0x24   :  { %p1132_p1 = scmp.ne.s32.totalorder %s64_s18, %s1131_s10  ;;  %p1137_p3 = scmp.lt.s32.totalorder %s1131_s10, %s1131_s10 }
  0x26   :  { %p1138_p4 = por %p1137_p3, %p1136_p2 }
  0x28   :  { %p1139_p5 = pnand %p1138_p4, %p1132_p1 }
  0x2a   :  { %1142 = shalt.err (!%p1139_p5)
}
  0x2b   :  { %69 = dma.hbm_to_vmem [thread:$0]  %s1407_s7, 1024, %s64_s18, [#allocation6], %s1193_s23, %s1193_s23, %s1194_s24  }
  0x2c   :  { %s1197_s25 = smov [#allocation10]  }
  0x2d   :  { %s95_s26 = sshll.u32 %s1197_s25, 4  ;;  %s96_s26 = int_to_ptr.vmem [resolvable:$true] %s95_s26 }
  0x2e   :  { %s1151_s27 = scalar_lea.vmem %s96_s26, 1024  ;;  %p1156_p7 = scmp.lt.s32.totalorder %s96_s26, %s96_s26 }
  0x2f   :  { %p1152_p6 = scmp.ne.s32.totalorder %s96_s26, %s1151_s27  ;;  %p1157_p8 = scmp.lt.s32.totalorder %s1151_s27, %s1151_s27 }
  0x31   :  { %p1158_p9 = por %p1157_p8, %p1156_p7 }
  0x33   :  { %p1159_p10 = pnand %p1158_p9, %p1152_p6 }
  0x35   :  { %1162 = shalt.err (!%p1159_p10)
}
  0x36   :  { %101 = dma.hbm_to_vmem [thread:$0]  %s1413_s13, 1024, %s96_s26, [#allocation9], %s1193_s23, %s1193_s23, %s1194_s24  }
  0x37   :  { %1183 = dma.done.wait [#allocation3], 1024  }
  0x38   :  { %1184 = vsyncadd [#allocation3], 4294966272 }
  0x39   :  { %1185 = dma.done.wait [#allocation6], 2048  }
  0x3a   :  { %1186 = vsyncadd [#allocation6], 4294965248 }
  0x3b   :  { %1187 = dma.done.wait [#allocation9], 2048  }
  0x3c   :  { %1188 = vsyncadd [#allocation9], 4294965248  ;;  %v1198_v0 = vmov 0.0   ;;  %vm1199_vm0 = vmmov 0   ;;  %v1015_v1 = vld [vmem:[#allocation2 + $0x38] sm:$0xff]   ;;  %v1016_v2 = vld [vmem:[#allocation2 + $0x30] sm:$0xff]   ;;  %v248_v39 = vlaneseq }
  0x3d   :  { %905 = vmatprep.subr.bf16.mxu0 %v1198_v0  ;;  %921 = vmatprep.mubr.msk.bf16.mxu0 %vm1199_vm0, %v1198_v0  ;;  %v1017_v3 = vld [vmem:[#allocation2 + $0x28] sm:$0xff]   ;;  %v1018_v4 = vld [vmem:[#allocation2 + $0x20] sm:$0xff]   ;;  %v1019_v5 = vld [vmem:[#allocation2 + $0x18] sm:$0xff]   ;;  %s1200_s21 = smov [#allocation11]  }
  0x3e   :  { %925 = vmatprep.subr.bf16.mxu1 %v1198_v0  ;;  %941 = vmatprep.mubr.msk.bf16.mxu1 %vm1199_vm0, %v1198_v0  ;;  %v1020_v6 = vld [vmem:[#allocation2 + $0x10] sm:$0xff]   ;;  %v1021_v7 = vld [vmem:[#allocation2 + $0x8] sm:$0xff]   ;;  %v1022_v8 = vld [vmem:[#allocation2] sm:$0xff]   ;;  %v249_v40 = vshrl.u32 %v248_v39, 7  ;;  %s804_s22 = sshll.u32 %s1200_s21, 4  ;;  %s805_s22 = int_to_ptr.vmem [resolvable:$true] %s804_s22 }
  0x3f   :  { %906 = vmatpush3.bf16.msra.mxu0 %v1015_v1  ;;  %v120_v9 = vld [vmem:[%s1400_s0] sm:$0xf]  ;;  %v1023_v10 = vld [vmem:[#allocation5 + $0x38] sm:$0xff]   ;;  %v1024_v11 = vld [vmem:[#allocation5 + $0x30] sm:$0xff]   ;;  %p1168_p12 = scmp.lt.s32.totalorder %s805_s22, %s805_s22 }
  0x40   :  { %907 = vmatprep.subr.bf16.mxu0 %v1198_v0  ;;  %926 = vmatpush3.bf16.msra.mxu1 %v1023_v10  ;;  %v1025_v12 = vld [vmem:[#allocation5 + $0x28] sm:$0xff]   ;;  %v1026_v13 = vld [vmem:[#allocation5 + $0x20] sm:$0xff]   ;;  %v1027_v14 = vld [vmem:[#allocation5 + $0x18] sm:$0xff]   ;;  %v1341_v42 = vsub.s32 0, %v249_v40 }
  0x41   :  { %927 = vmatprep.subr.bf16.mxu1 %v1198_v0  ;;  %v1028_v15 = vld [vmem:[#allocation5 + $0x10] sm:$0xff]   ;;  %v1029_v16 = vld [vmem:[#allocation5 + $0x8] sm:$0xff]   ;;  %v1030_v17 = vld [vmem:[#allocation5] sm:$0xff]  }
  0x42   :  { %v225_v41 = vld [vmem:[%s1402_s2] sm:$0x1]  ;;  %v1031_v51 = vld [vmem:[#allocation7 + $0x38] sm:$0xff]   ;;  %v1032_v52 = vld [vmem:[#allocation7 + $0x30] sm:$0xff]  }
  0x43   :  { %908 = vmatpush3.bf16.msra.mxu0 %v1016_v2  ;;  %v823_v46 = vld [vmem:[%s1403_s3] ss:$0 sm:$0xff]  ;;  %v1033_v53 = vld [vmem:[#allocation7 + $0x28] sm:$0xff]   ;;  %v1035_v55 = vld [vmem:[#allocation7 + $0x18] sm:$0xff]  }
  0x44   :  { %909 = vmatprep.subr.bf16.mxu0 %v1198_v0  ;;  %928 = vmatpush3.bf16.msra.mxu1 %v1024_v11  ;;  %v1034_v54 = vld [vmem:[#allocation7 + $0x20] sm:$0xff]   ;;  %v1036_v56 = vld [vmem:[#allocation7 + $0x10] sm:$0xff]   ;;  %v1037_v57 = vld [vmem:[#allocation7 + $0x8] sm:$0xff]  }
  0x45   :  { %929 = vmatprep.subr.bf16.mxu1 %v1198_v0  ;;  %v1038_v58 = vld [vmem:[#allocation7] sm:$0xff]  }
  0x47   :  { %910 = vmatpush3.bf16.msra.mxu0 %v1017_v3 }
  0x48   :  { %911 = vmatprep.subr.bf16.mxu0 %v1198_v0  ;;  %930 = vmatpush3.bf16.msra.mxu1 %v1025_v12 }
  0x49   :  { %931 = vmatprep.subr.bf16.mxu1 %v1198_v0 }
  0x4b   :  { %912 = vmatpush3.bf16.msra.mxu0 %v1018_v4 }
  0x4c   :  { %913 = vmatprep.subr.bf16.mxu0 %v1198_v0  ;;  %932 = vmatpush3.bf16.msra.mxu1 %v1026_v13 }
  0x4d   :  { %933 = vmatprep.subr.bf16.mxu1 %v1198_v0 }
  0x4f   :  { %914 = vmatpush3.bf16.msra.mxu0 %v1019_v5 }
  0x50   :  { %915 = vmatprep.subr.bf16.mxu0 %v1198_v0  ;;  %934 = vmatpush3.bf16.msra.mxu1 %v1027_v14 }
  0x51   :  { %935 = vmatprep.subr.bf16.mxu1 %v1198_v0 }
  0x53   :  { %916 = vmatpush3.bf16.msra.mxu0 %v1020_v6 }
  0x54   :  { %917 = vmatprep.subr.bf16.mxu0 %v1198_v0  ;;  %936 = vmatpush3.bf16.msra.mxu1 %v1028_v15 }
  0x55   :  { %937 = vmatprep.subr.bf16.mxu1 %v1198_v0 }
  0x57   :  { %918 = vmatpush3.bf16.msra.mxu0 %v1021_v7 }
  0x58   :  { %919 = vmatprep.subr.bf16.mxu0 %v1198_v0  ;;  %938 = vmatpush3.bf16.msra.mxu1 %v1029_v16 }
  0x59   :  { %939 = vmatprep.subr.bf16.mxu1 %v1198_v0 }
  0x5b   :  { %920 = vmatpush3.bf16.msra.mxu0 %v1022_v8 }
  0x5c   :  { %945 = vmatprep.subr.bf16.mxu0 %v1198_v0  ;;  %940 = vmatpush3.bf16.msra.mxu1 %v1030_v17  ;;  %v367_v17 = vld [vmem:[%s1405_s5] sm:$0x1] }
  0x5d   :  { %965 = vmatprep.subr.bf16.mxu1 %v1198_v0 }
  0x5e   :  { %922 = vmatmul.mubr.bf16.vlgmr.msra.gmra.mxu0 %v120_v9 }
  0x5f   :  { %961 = vmatprep.mubr.msk.bf16.mxu0 %vm1199_vm0, %v1198_v0  ;;  %946 = vmatpush3.bf16.msra.mxu0 %v1031_v51 }
  0x60   :  { %947 = vmatprep.subr.bf16.mxu0 %v1198_v0 }
  0x63   :  { %948 = vmatpush3.bf16.msra.mxu0 %v1032_v52 }
  0x64   :  { %949 = vmatprep.subr.bf16.mxu0 %v1198_v0 }
  0x67   :  { %950 = vmatpush3.bf16.msra.mxu0 %v1033_v53 }
  0x68   :  { %951 = vmatprep.subr.bf16.mxu0 %v1198_v0 }
  0x6b   :  { %952 = vmatpush3.bf16.msra.mxu0 %v1034_v54 }
  0x6c   :  { %953 = vmatprep.subr.bf16.mxu0 %v1198_v0 }
  0x6f   :  { %954 = vmatpush3.bf16.msra.mxu0 %v1035_v55 }
  0x70   :  { %955 = vmatprep.subr.bf16.mxu0 %v1198_v0 }
  0x73   :  { %956 = vmatpush3.bf16.msra.mxu0 %v1036_v56  ;;  %v508_v56 = vld [vmem:[%s1408_s8] sm:$0x1] }
  0x74   :  { %957 = vmatprep.subr.bf16.mxu0 %v1198_v0 }
  0x77   :  { %958 = vmatpush3.bf16.msra.mxu0 %v1037_v57 }
  0x78   :  { %959 = vmatprep.subr.bf16.mxu0 %v1198_v0 }
  0x7b   :  { %960 = vmatpush3.bf16.msra.mxu0 %v1038_v58 }
  0x7c   :  { %985 = vmatprep.subr.bf16.mxu0 %v1198_v0 }
 0x11e   :  { %v219_v18 = vpop.f32.mrf.mxu0 }
 0x11f   :  { %v227_v19 = vrot.slane %v219_v18, 4 }
 0x120   :  { %v923_v20 = vpop.f32.mrf.mxu0 }
 0x121   :  { %v228_v21 = vadd.f32 %v227_v19, %v219_v18 }
 0x122   :  { %v222_v22 = vpop.f32.mrf.mxu0 }
 0x123   :  { %v229_v23 = vrot.slane %v228_v21, 2 }
 0x124   :  { %v924_v24 = vpop.f32.mrf.mxu0 }
 0x125   :  { %v230_v25 = vadd.f32 %v229_v23, %v228_v21  ;;  %v832_v21 = vld [vmem:[%s1406_s6] ss:$0 sm:$0xff] }
 0x127   :  { %v231_v26 = vrot.slane %v230_v25, 1 }
 0x129   :  { %v232_v27 = vadd.f32 %v231_v26, %v230_v25  ;;  %v1039_v26 = vld [vmem:[#allocation8 + $0x38] sm:$0xff]  }
 0x12b   :  { %v234_v28 = vmul.f32 0.125, %v232_v27  ;;  %v1040_v27 = vld [vmem:[#allocation8 + $0x30] sm:$0xff]  }
 0x12d   :  { %v235_v29 = vsub.f32 %v219_v18, %v234_v28  ;;  %v1041_v28 = vld [vmem:[#allocation8 + $0x28] sm:$0xff]  }
 0x12f   :  { %v236_v30 = vmul.f32 %v235_v29, %v235_v29 }
 0x131   :  { %v237_v31 = vrot.slane %v236_v30, 4 }
 0x133   :  { %v238_v32 = vadd.f32 %v237_v31, %v236_v30  ;;  %v1043_v30 = vld [vmem:[#allocation8 + $0x18] sm:$0xff]   ;;  %v1044_v31 = vld [vmem:[#allocation8 + $0x10] sm:$0xff]  }
 0x135   :  { %v239_v33 = vrot.slane %v238_v32, 2 }
 0x137   :  { %v240_v34 = vadd.f32 %v239_v33, %v238_v32  ;;  %v1045_v32 = vld [vmem:[#allocation8 + $0x8] sm:$0xff]   ;;  %v1046_v33 = vld [vmem:[#allocation8] sm:$0xff]  }
 0x139   :  { %v241_v35 = vrot.slane %v240_v34, 1 }
 0x13b   :  { %v242_v36 = vadd.f32 %v241_v35, %v240_v34 }
 0x13d   :  { %v243_v37 = vmul.f32 0.125, %v242_v36 }
 0x13f   :  { %v244_v38 = vadd.f32 1e-05, %v243_v37 }
 0x141   :  { %1055 = vrsqrt.f32 %v244_v38 }
 0x14e   :  { %v1056_v43 = vpop.eup %1055 }
 0x14f   :  { %v246_v44 = vmul.f32 %v1056_v43, %v225_v41 }
 0x151   :  { %v251_v45 = vrot.slane %v246_v44, %v1341_v42 }
 0x153   :  { %v253_v47 = vmul.f32 %v251_v45, %v235_v29  ;;  %v1042_v29 = vld [vmem:[#allocation8 + $0x20] sm:$0xff]  }
 0x155   :  { %v260_v48 = vadd.f32 %v823_v46, %v253_v47 }
 0x157   :  { %v261_v49 = vmax.f32 %v260_v48, 0.0 }
 0x159   :  { %v262_v50 = vpack.c.bf16 %v261_v49, %v261_v49 }
 0x15b   :  { %942 = vmatmul.mubr.bf16.vlgmr.msra.gmra.mxu1 %v262_v50 }
 0x15c   :  { %981 = vmatprep.mubr.msk.bf16.mxu1 %vm1199_vm0, %v1198_v0  ;;  %966 = vmatpush3.bf16.msra.mxu1 %v1039_v26 }
 0x15d   :  { %967 = vmatprep.subr.bf16.mxu1 %v1198_v0 }
 0x160   :  { %968 = vmatpush3.bf16.msra.mxu1 %v1040_v27 }
 0x161   :  { %969 = vmatprep.subr.bf16.mxu1 %v1198_v0 }
 0x164   :  { %970 = vmatpush3.bf16.msra.mxu1 %v1041_v28 }
 0x165   :  { %971 = vmatprep.subr.bf16.mxu1 %v1198_v0 }
 0x168   :  { %972 = vmatpush3.bf16.msra.mxu1 %v1042_v29 }
 0x169   :  { %973 = vmatprep.subr.bf16.mxu1 %v1198_v0 }
 0x16c   :  { %974 = vmatpush3.bf16.msra.mxu1 %v1043_v30  ;;  %v649_v30 = vld [vmem:[%s1411_s11] sm:$0x1]  ;;  %s1163_s11 = scalar_lea.vmem %s805_s22, 128 }
 0x16d   :  { %975 = vmatprep.subr.bf16.mxu1 %v1198_v0  ;;  %p1164_p11 = scmp.ne.s32.totalorder %s805_s22, %s1163_s11  ;;  %p1169_p13 = scmp.lt.s32.totalorder %s1163_s11, %s1163_s11 }
 0x16f   :  { %p1170_p0 = por %p1169_p13, %p1168_p12 }
 0x170   :  { %976 = vmatpush3.bf16.msra.mxu1 %v1044_v31 }
 0x171   :  { %977 = vmatprep.subr.bf16.mxu1 %v1198_v0  ;;  %p1171_p1 = pnand %p1170_p0, %p1164_p11 }
 0x174   :  { %978 = vmatpush3.bf16.msra.mxu1 %v1045_v32 }
 0x175   :  { %979 = vmatprep.subr.bf16.mxu1 %v1198_v0 }
 0x178   :  { %980 = vmatpush3.bf16.msra.mxu1 %v1046_v33 }
 0x21b   :  { %v361_v59 = vpop.f32.mrf.mxu1 }
 0x21c   :  { %v369_v60 = vrot.slane %v361_v59, 4 }
 0x21d   :  { %v943_v61 = vpop.f32.mrf.mxu1 }
 0x21e   :  { %v370_v62 = vadd.f32 %v369_v60, %v361_v59  ;;  %v841_v60 = vld [vmem:[%s1409_s9] ss:$0 sm:$0xff] }
 0x21f   :  { %v364_v63 = vpop.f32.mrf.mxu1 }
 0x220   :  { %v371_v1 = vrot.slane %v370_v62, 2 }
 0x221   :  { %v944_v2 = vpop.f32.mrf.mxu1 }
 0x222   :  { %v372_v3 = vadd.f32 %v371_v1, %v370_v62  ;;  %v1047_v2 = vld [vmem:[#allocation10 + $0x38] sm:$0xff]  }
 0x224   :  { %v373_v4 = vrot.slane %v372_v3, 1 }
 0x226   :  { %v374_v5 = vadd.f32 %v373_v4, %v372_v3  ;;  %v1048_v3 = vld [vmem:[#allocation10 + $0x30] sm:$0xff]   ;;  %v1049_v4 = vld [vmem:[#allocation10 + $0x28] sm:$0xff]  }
 0x228   :  { %v375_v6 = vmul.f32 0.125, %v374_v5  ;;  %v1050_v5 = vld [vmem:[#allocation10 + $0x20] sm:$0xff]  }
 0x22a   :  { %v376_v7 = vsub.f32 %v361_v59, %v375_v6  ;;  %v1051_v6 = vld [vmem:[#allocation10 + $0x18] sm:$0xff]  }
 0x22c   :  { %v377_v8 = vmul.f32 %v376_v7, %v376_v7 }
 0x22e   :  { %v378_v9 = vrot.slane %v377_v8, 4 }
 0x230   :  { %v379_v10 = vadd.f32 %v378_v9, %v377_v8  ;;  %v1053_v8 = vld [vmem:[#allocation10 + $0x8] sm:$0xff]   ;;  %v1054_v9 = vld [vmem:[#allocation10] sm:$0xff]  }
 0x232   :  { %v380_v11 = vrot.slane %v379_v10, 2 }
 0x234   :  { %v381_v12 = vadd.f32 %v380_v11, %v379_v10 }
 0x236   :  { %v382_v13 = vrot.slane %v381_v12, 1 }
 0x238   :  { %v383_v14 = vadd.f32 %v382_v13, %v381_v12 }
 0x23a   :  { %v384_v15 = vmul.f32 0.125, %v383_v14 }
 0x23c   :  { %v385_v16 = vadd.f32 1e-05, %v384_v15 }
 0x23e   :  { %1057 = vrsqrt.f32 %v385_v16 }
 0x24b   :  { %v1058_v18 = vpop.eup %1057 }
 0x24c   :  { %v387_v19 = vmul.f32 %v1058_v18, %v367_v17 }
 0x24e   :  { %v392_v20 = vrot.slane %v387_v19, %v1341_v42 }
 0x250   :  { %v394_v22 = vmul.f32 %v392_v20, %v376_v7  ;;  %v1052_v7 = vld [vmem:[#allocation10 + $0x10] sm:$0xff]  }
 0x252   :  { %v401_v23 = vadd.f32 %v832_v21, %v394_v22 }
 0x254   :  { %v402_v24 = vmax.f32 %v401_v23, 0.0 }
 0x256   :  { %v403_v25 = vpack.c.bf16 %v402_v24, %v402_v24 }
 0x258   :  { %962 = vmatmul.mubr.bf16.vlgmr.msra.gmra.mxu0 %v403_v25 }
 0x259   :  { %1001 = vmatprep.mubr.msk.bf16.mxu0 %vm1199_vm0, %v1198_v0  ;;  %986 = vmatpush3.bf16.msra.mxu0 %v1047_v2 }
 0x25a   :  { %987 = vmatprep.subr.bf16.mxu0 %v1198_v0 }
 0x25d   :  { %988 = vmatpush3.bf16.msra.mxu0 %v1048_v3 }
 0x25e   :  { %989 = vmatprep.subr.bf16.mxu0 %v1198_v0 }
 0x261   :  { %990 = vmatpush3.bf16.msra.mxu0 %v1049_v4 }
 0x262   :  { %991 = vmatprep.subr.bf16.mxu0 %v1198_v0 }
 0x265   :  { %992 = vmatpush3.bf16.msra.mxu0 %v1050_v5 }
 0x266   :  { %993 = vmatprep.subr.bf16.mxu0 %v1198_v0 }
 0x269   :  { %994 = vmatpush3.bf16.msra.mxu0 %v1051_v6 }
 0x26a   :  { %995 = vmatprep.subr.bf16.mxu0 %v1198_v0 }
 0x26d   :  { %996 = vmatpush3.bf16.msra.mxu0 %v1052_v7 }
 0x26e   :  { %997 = vmatprep.subr.bf16.mxu0 %v1198_v0 }
 0x271   :  { %998 = vmatpush3.bf16.msra.mxu0 %v1053_v8 }
 0x272   :  { %999 = vmatprep.subr.bf16.mxu0 %v1198_v0 }
 0x275   :  { %1000 = vmatpush3.bf16.msra.mxu0 %v1054_v9 }
 0x318   :  { %v502_v34 = vpop.f32.mrf.mxu0 }
 0x319   :  { %v510_v35 = vrot.slane %v502_v34, 4 }
 0x31a   :  { %v963_v36 = vpop.f32.mrf.mxu0 }
 0x31b   :  { %v511_v37 = vadd.f32 %v510_v35, %v502_v34 }
 0x31c   :  { %v505_v38 = vpop.f32.mrf.mxu0 }
 0x31d   :  { %v512_v39 = vrot.slane %v511_v37, 2 }
 0x31e   :  { %v964_v40 = vpop.f32.mrf.mxu0 }
 0x31f   :  { %v513_v41 = vadd.f32 %v512_v39, %v511_v37  ;;  %v851_v39 = vld [vmem:[%s1414_s14] ss:$0 sm:$0xff] }
 0x321   :  { %v514_v43 = vrot.slane %v513_v41, 1 }
 0x323   :  { %v515_v44 = vadd.f32 %v514_v43, %v513_v41 }
 0x325   :  { %v516_v45 = vmul.f32 0.125, %v515_v44 }
 0x327   :  { %v517_v46 = vsub.f32 %v502_v34, %v516_v45  ;;  %v850_v34 = vld [vmem:[%s1412_s12] ss:$0 sm:$0xff] }
 0x329   :  { %v518_v47 = vmul.f32 %v517_v46, %v517_v46 }
 0x32b   :  { %v519_v48 = vrot.slane %v518_v47, 4 }
 0x32d   :  { %v520_v49 = vadd.f32 %v519_v48, %v518_v47 }
 0x32f   :  { %v521_v50 = vrot.slane %v520_v49, 2 }
 0x331   :  { %v522_v51 = vadd.f32 %v521_v50, %v520_v49 }
 0x333   :  { %v523_v52 = vrot.slane %v522_v51, 1 }
 0x335   :  { %v524_v53 = vadd.f32 %v523_v52, %v522_v51 }
 0x337   :  { %v525_v54 = vmul.f32 0.125, %v524_v53 }
 0x339   :  { %v526_v55 = vadd.f32 1e-05, %v525_v54 }
 0x33b   :  { %1059 = vrsqrt.f32 %v526_v55 }
 0x348   :  { %v1060_v57 = vpop.eup %1059 }
 0x349   :  { %v528_v58 = vmul.f32 %v1060_v57, %v508_v56 }
 0x34b   :  { %v533_v59 = vrot.slane %v528_v58, %v1341_v42 }
 0x34d   :  { %v535_v61 = vmul.f32 %v533_v59, %v517_v46 }
 0x34f   :  { %v542_v62 = vadd.f32 %v841_v60, %v535_v61 }
 0x351   :  { %v543_v63 = vmax.f32 %v542_v62, 0.0 }
 0x353   :  { %v544_v1 = vpack.c.bf16 %v543_v63, %v543_v63 }
 0x355   :  { %982 = vmatmul.mubr.bf16.vlgmr.msra.gmra.mxu1 %v544_v1 }
 0x415   :  { %v643_v10 = vpop.f32.mrf.mxu1 }
 0x416   :  { %v651_v11 = vrot.slane %v643_v10, 4 }
 0x417   :  { %v983_v12 = vpop.f32.mrf.mxu1 }
 0x418   :  { %v652_v13 = vadd.f32 %v651_v11, %v643_v10 }
 0x419   :  { %v646_v14 = vpop.f32.mrf.mxu1 }
 0x41a   :  { %v653_v15 = vrot.slane %v652_v13, 2 }
 0x41b   :  { %v984_v16 = vpop.f32.mrf.mxu1 }
 0x41c   :  { %v654_v17 = vadd.f32 %v653_v15, %v652_v13 }
 0x41e   :  { %v655_v18 = vrot.slane %v654_v17, 1 }
 0x420   :  { %v656_v19 = vadd.f32 %v655_v18, %v654_v17 }
 0x422   :  { %v657_v20 = vmul.f32 0.125, %v656_v19 }
 0x424   :  { %v658_v21 = vsub.f32 %v643_v10, %v657_v20 }
 0x426   :  { %v659_v22 = vmul.f32 %v658_v21, %v658_v21 }
 0x428   :  { %v660_v23 = vrot.slane %v659_v22, 4 }
 0x42a   :  { %v661_v24 = vadd.f32 %v660_v23, %v659_v22 }
 0x42c   :  { %v662_v25 = vrot.slane %v661_v24, 2 }
 0x42e   :  { %v663_v26 = vadd.f32 %v662_v25, %v661_v24 }
 0x430   :  { %v664_v0 = vrot.slane %v663_v26, 1 }
 0x432   :  { %v665_v27 = vadd.f32 %v664_v0, %v663_v26 }
 0x434   :  { %v666_v28 = vmul.f32 0.125, %v665_v27 }
 0x436   :  { %v667_v29 = vadd.f32 1e-05, %v666_v28 }
 0x438   :  { %1061 = vrsqrt.f32 %v667_v29 }
 0x445   :  { %v1062_v31 = vpop.eup %1061 }
 0x446   :  { %v669_v32 = vmul.f32 %v1062_v31, %v649_v30 }
 0x448   :  { %v674_v33 = vrot.slane %v669_v32, %v1341_v42 }
 0x44a   :  { %v676_v35 = vmul.f32 %v674_v33, %v658_v21 }
 0x44c   :  { %v683_v36 = vadd.f32 %v850_v34, %v676_v35 }
 0x44e   :  { %v684_v37 = vmax.f32 %v683_v36, 0.0 }
 0x450   :  { %v685_v38 = vpack.c.bf16 %v684_v37, %v684_v37 }
 0x452   :  { %1002 = vmatmul.mubr.bf16.vlgmr.msra.gmra.mxu0 %v685_v38 }
 0x512   :  { %v791_v40 = vpop.f32.mrf.mxu0 }
 0x513   :  { %v792_v41 = vadd.f32 %v851_v39, %v791_v40 }
 0x514   :  { %v1003_v43 = vpop.f32.mrf.mxu0 }
 0x515   :  { %797 = vst [vmem:[#allocation11] sm:$0xff] %v792_v41 }
 0x516   :  { %v794_v42 = vpop.f32.mrf.mxu0 }
 0x517   :  { %1174 = shalt.err (!%p1171_p1)
}
 0x518   :  { %807 = dma.vmem_to_hbm [thread:$0]  %s805_s22, 128, %s1415_s15, [#allocation4]   ;;  %v1004_v44 = vpop.f32.mrf.mxu0 }
 0x519   :  { %1189 = dma.done.wait [#allocation4], 128  }
 0x51a   :  { %1190 = vsyncadd [#allocation4], 4294967168 }
 0x51b   :  { %811 = vsyncpa [#allocation3], 1 }
 0x51c   :  { %812 = vsyncpa [#allocation6], 1 }
 0x51d   :  { %813 = vsyncpa [#allocation9], 1 }
 0x51e   :  { %814 = vsyncpa [#allocation4], 1 }

</bundles_post_ra>
